<compile_context>
chip_gen: v7x
topology: tpu7x:2x2x1
jax: 0.10.0
libtpu: 0.0.40
codegen_flags: <defaults>
</compile_context>

<pallas_src>
import math

import jax
import jax.numpy as jnp
from jax.experimental import pallas as pl
from jax.experimental.pallas import tpu as pltpu

UD_POS = ((0, 1), (1, 0))   # up-diagonal (anti-diagonal) positions of a 2x2 block
DD_POS = ((0, 0), (1, 1))   # down-diagonal (main-diagonal) positions of a 2x2 block


# ----------------------------------------------------------------------------- kernel
def _make_kernel(levels):
    def kernel(x_ref, o_ref):
        # x_ref: (C, 16, th, tw) phase-plane tiles; o_ref: (levels + 1, 16, th, tw)
        # phase index p = 4*r + s, where full image[4*i + r, 4*j + s] = plane[p][i, j]
        C = x_ref.shape[0]

        # per-channel accumulate; the 1/C of the channel mean (by_channel=False)
        # is folded into the level-1 Haar scale below.
        xs = x_ref[0].astype(jnp.float32)
        for c in range(1, C):
            xs = xs + x_ref[c].astype(jnp.float32)
        Y = {(r, s): xs[4 * r + s] for r in range(4) for s in range(4)}

        def haar_pair(p, q, scale=0.5):
            # Haar low-pass / detail of a diagonal pair
            return (p + q) * scale, (p - q) * scale

        def level_one(Yc, scale):
            # level 1: one Haar (H -> H/2) per orientation + diagonal upsample back to H
            low, det = {}, {}
            for r1 in (0, 1):
                for s1 in (0, 1):
                    ud_lp, ud_d = haar_pair(Yc[(2 * r1, 2 * s1 + 1)], Yc[(2 * r1 + 1, 2 * s1)], scale)
                    dd_lp, dd_d = haar_pair(Yc[(2 * r1, 2 * s1)],     Yc[(2 * r1 + 1, 2 * s1 + 1)], scale)
                    for r2, s2 in UD_POS:
                        low[(2 * r1 + r2, 2 * s1 + s2)] = ud_lp
                        det[(2 * r1 + r2, 2 * s1 + s2)] = ud_d
                    for r2, s2 in DD_POS:
                        low[(2 * r1 + r2, 2 * s1 + s2)] = dd_lp
                        det[(2 * r1 + r2, 2 * s1 + s2)] = dd_d
            return low, det

        def level_n(Yc):
            # levels >= 2: decompose_diagonal_one_level
            # U = low-pass of up-diagonal Haar(t) at H/2 (its 2x2 phases at H/4);
            # D = low-pass of down-diagonal Haar(t) at H/2.
            U, D = {}, {}
            for r1 in (0, 1):
                for s1 in (0, 1):
                    U[(r1, s1)] = (Yc[(2 * r1, 2 * s1 + 1)] + Yc[(2 * r1 + 1, 2 * s1)]) * 0.5
                    D[(r1, s1)] = (Yc[(2 * r1, 2 * s1)]     + Yc[(2 * r1 + 1, 2 * s1 + 1)]) * 0.5
            # second-level Haar coefficients; key = (inner upsample, outer upsample)
            comp = {
                ("UD", "UD"): haar_pair(U[(0, 1)], U[(1, 0)]),   # ud_ud_*   (up-up)
                ("DD", "UD"): haar_pair(U[(0, 0)], U[(1, 1)]),   # dd_ud_*   (down then up)
                ("DD", "DD"): haar_pair(D[(0, 0)], D[(1, 1)]),   # dd_dd_*   (down-down)
                ("UD", "DD"): haar_pair(D[(0, 1)], D[(1, 0)]),   # ud_dd_*   (up then down)
            }
            low, det = {}, {}
            for o1, inner in (("UD", UD_POS), ("DD", DD_POS)):
                for o2, outer in (("UD", UD_POS), ("DD", DD_POS)):
                    lp, d = comp[(o1, o2)]
                    for r1, s1 in inner:
                        for r2, s2 in outer:
                            low[(2 * r1 + r2, 2 * s1 + s2)] = lp
                            det[(2 * r1 + r2, 2 * s1 + s2)] = d
            return low, det

        for level in range(1, levels + 1):
            if level == 1:
                low, det = level_one(Y, 0.5 / C)   # 1/C channel mean folded in here
            else:
                low, det = level_n(Y)
            # one wide stacked store per level instead of 16 scalar-plane stores
            o_ref[level - 1] = jnp.stack(
                [det[(r, s)] for r in range(4) for s in range(4)], axis=0)
            if level == levels:
                o_ref[levels] = jnp.stack(
                    [low[(r, s)] for r in range(4) for s in range(4)], axis=0)
            Y = low

    return kernel


# ----------------------------------------------------------------------------- wrapper
def haar_decomposition_2d(x, levels=None, tile_rows=8):
    """x: (B, C, H, W), NCHW. Returns (B, levels + 1, H, W) float32."""
    B, C, H, W = x.shape
    assert H % 4 == 0 and W % 4 == 0, "H and W must be divisible by 4 for multi-level diagonal Haar"
    max_levels = int(math.floor(math.log2(min(H, W))))
    levels = max_levels if levels is None else int(levels)
    assert levels >= 1, "levels must be >= 1"
    h4, w4 = H // 4, W // 4
    P = h4 * w4                       # elements per phase plane

    # lane-dense flattening of each phase plane: (h4, w4) -> (R, L) with L = 128
    # whenever possible (every vld/vst uses all 128 lanes, unmasked stores).
    if P % 128 == 0:
        L = 128
        R = P // 128
    else:
        # TODO(synk): small / ragged phase planes (P not a multiple of 128) fall
        # back to one lane-sparse tile; fine for tiny inputs, suboptimal for large.
        L = P
        R = 1
    tr = tile_rows if (R % tile_rows == 0 and R >= tile_rows) else R
    grid = (B, R // tr)

    # glue: split each HxW image into 16 phase planes and flatten lane-dense.
    # (full-array transpose; see TODO at top about fusing this into the kernel)
    xp = (x.reshape(B, C, h4, 4, w4, 4)
            .transpose(0, 1, 3, 5, 2, 4)
            .reshape(B, C, 16, R, L))

    out_phase = pl.pallas_call(
        _make_kernel(levels),
        out_shape=jax.ShapeDtypeStruct((B, levels + 1, 16, R, L), jnp.float32),
        grid=grid,
        in_specs=[pl.BlockSpec((None, C, 16, tr, L), lambda b, r: (b, 0, 0, r, 0))],
        out_specs=pl.BlockSpec((None, levels + 1, 16, tr, L), lambda b, r: (b, 0, 0, r, 0)),
        compiler_params=pltpu.CompilerParams(
            dimension_semantics=("parallel", "parallel")),
    )(xp)

    # glue: reassemble phase planes back into full-resolution images
    dec = (out_phase.reshape(B, levels + 1, 4, 4, h4, w4)
                    .transpose(0, 1, 4, 2, 5, 3)
                    .reshape(B, levels + 1, H, W))
    return dec


# ----------------------------------------------------------------------------- pure-JAX reference
def _ref_haar_ud(t):
    b = t[..., 0::2, 1::2]
    c = t[..., 1::2, 0::2]
    return (b + c) * 0.5, (b - c) * 0.5


def _ref_haar_dd(t):
    a = t[..., 0::2, 0::2]
    d = t[..., 1::2, 1::2]
    return (a + d) * 0.5, (a - d) * 0.5


def _ref_upsample(t, positions):
    out = jnp.zeros(t.shape[:-2] + (t.shape[-2] * 2, t.shape[-1] * 2), t.dtype)
    for r, s in positions:
        out = out.at[..., r::2, s::2].set(t)
    return out


def reference_forward(x, levels=None):
    B, C, H, W = x.shape
    if levels is None:
        levels = int(math.floor(math.log2(min(H, W))))
    t = jnp.mean(x.astype(jnp.float32), axis=1)
    dec = jnp.zeros((B, levels + 1, H, W), jnp.float32)
    for level in range(1, levels + 1):
        if level == 1:
            ud_lp, ud_d = _ref_haar_ud(t)
            ud_lp = _ref_upsample(ud_lp, UD_POS)
            ud_d = _ref_upsample(ud_d, UD_POS)
            dd_lp, dd_d = _ref_haar_dd(t)
            dd_lp = _ref_upsample(dd_lp, DD_POS)
            dd_d = _ref_upsample(dd_d, DD_POS)
            low = ud_lp + dd_lp
            det = ud_d + dd_d
        else:
            ud, _ = _ref_haar_ud(t)
            uul, uud = _ref_haar_ud(ud)
            uul = _ref_upsample(_ref_upsample(uul, UD_POS), UD_POS)
            uud = _ref_upsample(_ref_upsample(uud, UD_POS), UD_POS)
            dul, dud = _ref_haar_dd(ud)
            dul = _ref_upsample(_ref_upsample(dul, DD_POS), UD_POS)
            dud = _ref_upsample(_ref_upsample(dud, DD_POS), UD_POS)
            dd, _ = _ref_haar_dd(t)
            ddl, ddd = _ref_haar_dd(dd)
            ddl = _ref_upsample(_ref_upsample(ddl, DD_POS), DD_POS)
            ddd = _ref_upsample(_ref_upsample(ddd, DD_POS), DD_POS)
            udl, udd = _ref_haar_ud(dd)
            udl = _ref_upsample(_ref_upsample(udl, UD_POS), DD_POS)
            udd = _ref_upsample(_ref_upsample(udd, UD_POS), DD_POS)
            low = (uul + dul) + (ddl + udl)
            det = (uud + dud) + (ddd + udd)
        dec = dec.at[:, level - 1].set(det)
        if level == levels:
            dec = dec.at[:, levels].set(low)
        t = low
    return dec


# ----------------------------------------------------------------------------- main
if __name__ == "__main__":
    key = jax.random.PRNGKey(0)

    # 1) small smoke test (exercises the lane-sparse fallback path)
    B, C, H, W = 2, 4, 16, 16
    x = jax.random.normal(key, (B, C, H, W), dtype=jnp.float32)
    dec = jax.block_until_ready(haar_decomposition_2d(x))
    levels = int(math.floor(math.log2(min(H, W))))
    assert dec.shape == (B, levels + 1, H, W), dec.shape
    ref = reference_forward(x)
    err = float(jnp.max(jnp.abs(dec - ref)))
    if err > 1e-4:
        raise AssertionError(f"Pallas kernel mismatch vs reference (small), max abs err = {err}")

    # explicit levels
    dec2 = jax.block_until_ready(haar_decomposition_2d(x, levels=2))
    ref2 = reference_forward(x, levels=2)
    err2 = float(jnp.max(jnp.abs(dec2 - ref2)))
    if err2 > 1e-4:
        raise AssertionError(f"Pallas kernel mismatch vs reference (levels=2), max abs err = {err2}")

    # 2) lane-dense, spatially-tiled path (non-square, multi-tile grid)
    B2, C2, H2, W2 = 2, 3, 128, 512
    x2 = jax.random.normal(jax.random.PRNGKey(0), (B2, C2, H2, W2), dtype=jnp.float32)
    dec3 = jax.block_until_ready(haar_decomposition_2d(x2))
    lv2 = int(math.floor(math.log2(min(H2, W2))))
    assert dec3.shape == (B2, lv2 + 1, H2, W2), dec3.shape
    ref3 = reference_forward(x2)
    err3 = float(jnp.max(jnp.abs(dec3 - ref3)))
    if err3 > 1e-4:
        raise AssertionError(f"Pallas kernel mismatch vs reference (tiled), max abs err = {err3}")

    print("KERNEL_OK")
</pallas_src>

<mosaic_0001>
module attributes {stable_mosaic.version = 11 : i64} {
  func.func @kernel(%arg0: i32, %arg1: i32, %arg2: memref<1x4x16x1x16xf32, #tpu.memory_space<vmem>>, %arg3: memref<1x5x16x1x16xf32, #tpu.memory_space<vmem>>) attributes {dimension_semantics = [#tpu.dimension_semantics<parallel>, #tpu.dimension_semantics<parallel>], iteration_bounds = array<i64: 2, 1>, scalar_prefetch = 0 : i64, scratch_operands = 0 : i64, tpu.core_type = #tpu.core_type<tc>, window_params = [{transform_indices = @transform_0, window_bounds = array<i64: 1, 4, 16, 1, 16>}, {transform_indices = @transform_1, window_bounds = array<i64: 1, 5, 16, 1, 16>}]} {
    %c0 = arith.constant 0 : index
    %c0_0 = arith.constant 0 : index
    %c0_1 = arith.constant 0 : index
    %c0_2 = arith.constant 0 : index
    %c0_3 = arith.constant 0 : index
    %0 = vector.load %arg2[%c0, %c0_0, %c0_1, %c0_2, %c0_3] : memref<1x4x16x1x16xf32, #tpu.memory_space<vmem>>, vector<1x1x16x1x16xf32>
    %1 = vector.shape_cast %0 : vector<1x1x16x1x16xf32> to vector<16x1x16xf32>
    %c0_4 = arith.constant 0 : index
    %c1 = arith.constant 1 : index
    %c0_5 = arith.constant 0 : index
    %c0_6 = arith.constant 0 : index
    %c0_7 = arith.constant 0 : index
    %2 = vector.load %arg2[%c0_4, %c1, %c0_5, %c0_6, %c0_7] : memref<1x4x16x1x16xf32, #tpu.memory_space<vmem>>, vector<1x1x16x1x16xf32>
    %3 = vector.shape_cast %2 : vector<1x1x16x1x16xf32> to vector<16x1x16xf32>
    %4 = arith.addf %1, %3 : vector<16x1x16xf32>
    %c0_8 = arith.constant 0 : index
    %c2 = arith.constant 2 : index
    %c0_9 = arith.constant 0 : index
    %c0_10 = arith.constant 0 : index
    %c0_11 = arith.constant 0 : index
    %5 = vector.load %arg2[%c0_8, %c2, %c0_9, %c0_10, %c0_11] : memref<1x4x16x1x16xf32, #tpu.memory_space<vmem>>, vector<1x1x16x1x16xf32>
    %6 = vector.shape_cast %5 : vector<1x1x16x1x16xf32> to vector<16x1x16xf32>
    %7 = arith.addf %4, %6 : vector<16x1x16xf32>
    %c0_12 = arith.constant 0 : index
    %c3 = arith.constant 3 : index
    %c0_13 = arith.constant 0 : index
    %c0_14 = arith.constant 0 : index
    %c0_15 = arith.constant 0 : index
    %8 = vector.load %arg2[%c0_12, %c3, %c0_13, %c0_14, %c0_15] : memref<1x4x16x1x16xf32, #tpu.memory_space<vmem>>, vector<1x1x16x1x16xf32>
    %9 = vector.shape_cast %8 : vector<1x1x16x1x16xf32> to vector<16x1x16xf32>
    %10 = arith.addf %7, %9 : vector<16x1x16xf32>
    %11 = vector.extract_strided_slice %10 {offsets = [0, 0, 0], sizes = [1, 1, 16], strides = [1, 1, 1]} : vector<16x1x16xf32> to vector<1x1x16xf32>
    %12 = vector.shape_cast %11 : vector<1x1x16xf32> to vector<1x16xf32>
    %13 = vector.extract_strided_slice %10 {offsets = [1, 0, 0], sizes = [1, 1, 16], strides = [1, 1, 1]} : vector<16x1x16xf32> to vector<1x1x16xf32>
    %14 = vector.shape_cast %13 : vector<1x1x16xf32> to vector<1x16xf32>
    %15 = vector.extract_strided_slice %10 {offsets = [2, 0, 0], sizes = [1, 1, 16], strides = [1, 1, 1]} : vector<16x1x16xf32> to vector<1x1x16xf32>
    %16 = vector.shape_cast %15 : vector<1x1x16xf32> to vector<1x16xf32>
    %17 = vector.extract_strided_slice %10 {offsets = [3, 0, 0], sizes = [1, 1, 16], strides = [1, 1, 1]} : vector<16x1x16xf32> to vector<1x1x16xf32>
    %18 = vector.shape_cast %17 : vector<1x1x16xf32> to vector<1x16xf32>
    %19 = vector.extract_strided_slice %10 {offsets = [4, 0, 0], sizes = [1, 1, 16], strides = [1, 1, 1]} : vector<16x1x16xf32> to vector<1x1x16xf32>
    %20 = vector.shape_cast %19 : vector<1x1x16xf32> to vector<1x16xf32>
    %21 = vector.extract_strided_slice %10 {offsets = [5, 0, 0], sizes = [1, 1, 16], strides = [1, 1, 1]} : vector<16x1x16xf32> to vector<1x1x16xf32>
    %22 = vector.shape_cast %21 : vector<1x1x16xf32> to vector<1x16xf32>
    %23 = vector.extract_strided_slice %10 {offsets = [6, 0, 0], sizes = [1, 1, 16], strides = [1, 1, 1]} : vector<16x1x16xf32> to vector<1x1x16xf32>
    %24 = vector.shape_cast %23 : vector<1x1x16xf32> to vector<1x16xf32>
    %25 = vector.extract_strided_slice %10 {offsets = [7, 0, 0], sizes = [1, 1, 16], strides = [1, 1, 1]} : vector<16x1x16xf32> to vector<1x1x16xf32>
    %26 = vector.shape_cast %25 : vector<1x1x16xf32> to vector<1x16xf32>
    %27 = vector.extract_strided_slice %10 {offsets = [8, 0, 0], sizes = [1, 1, 16], strides = [1, 1, 1]} : vector<16x1x16xf32> to vector<1x1x16xf32>
    %28 = vector.shape_cast %27 : vector<1x1x16xf32> to vector<1x16xf32>
    %29 = vector.extract_strided_slice %10 {offsets = [9, 0, 0], sizes = [1, 1, 16], strides = [1, 1, 1]} : vector<16x1x16xf32> to vector<1x1x16xf32>
    %30 = vector.shape_cast %29 : vector<1x1x16xf32> to vector<1x16xf32>
    %31 = vector.extract_strided_slice %10 {offsets = [10, 0, 0], sizes = [1, 1, 16], strides = [1, 1, 1]} : vector<16x1x16xf32> to vector<1x1x16xf32>
    %32 = vector.shape_cast %31 : vector<1x1x16xf32> to vector<1x16xf32>
    %33 = vector.extract_strided_slice %10 {offsets = [11, 0, 0], sizes = [1, 1, 16], strides = [1, 1, 1]} : vector<16x1x16xf32> to vector<1x1x16xf32>
    %34 = vector.shape_cast %33 : vector<1x1x16xf32> to vector<1x16xf32>
    %35 = vector.extract_strided_slice %10 {offsets = [12, 0, 0], sizes = [1, 1, 16], strides = [1, 1, 1]} : vector<16x1x16xf32> to vector<1x1x16xf32>
    %36 = vector.shape_cast %35 : vector<1x1x16xf32> to vector<1x16xf32>
    %37 = vector.extract_strided_slice %10 {offsets = [13, 0, 0], sizes = [1, 1, 16], strides = [1, 1, 1]} : vector<16x1x16xf32> to vector<1x1x16xf32>
    %38 = vector.shape_cast %37 : vector<1x1x16xf32> to vector<1x16xf32>
    %39 = vector.extract_strided_slice %10 {offsets = [14, 0, 0], sizes = [1, 1, 16], strides = [1, 1, 1]} : vector<16x1x16xf32> to vector<1x1x16xf32>
    %40 = vector.shape_cast %39 : vector<1x1x16xf32> to vector<1x16xf32>
    %41 = vector.extract_strided_slice %10 {offsets = [15, 0, 0], sizes = [1, 1, 16], strides = [1, 1, 1]} : vector<16x1x16xf32> to vector<1x1x16xf32>
    %42 = vector.shape_cast %41 : vector<1x1x16xf32> to vector<1x16xf32>
    %43 = arith.addf %14, %20 : vector<1x16xf32>
    %cst = arith.constant 1.250000e-01 : f32
    %44 = vector.broadcast %cst : f32 to vector<1x16xf32>
    %45 = arith.mulf %43, %44 : vector<1x16xf32>
    %46 = arith.subf %14, %20 : vector<1x16xf32>
    %cst_16 = arith.constant 1.250000e-01 : f32
    %47 = vector.broadcast %cst_16 : f32 to vector<1x16xf32>
    %48 = arith.mulf %46, %47 : vector<1x16xf32>
    %49 = arith.addf %12, %22 : vector<1x16xf32>
    %cst_17 = arith.constant 1.250000e-01 : f32
    %50 = vector.broadcast %cst_17 : f32 to vector<1x16xf32>
    %51 = arith.mulf %49, %50 : vector<1x16xf32>
    %52 = arith.subf %12, %22 : vector<1x16xf32>
    %cst_18 = arith.constant 1.250000e-01 : f32
    %53 = vector.broadcast %cst_18 : f32 to vector<1x16xf32>
    %54 = arith.mulf %52, %53 : vector<1x16xf32>
    %55 = arith.addf %18, %24 : vector<1x16xf32>
    %cst_19 = arith.constant 1.250000e-01 : f32
    %56 = vector.broadcast %cst_19 : f32 to vector<1x16xf32>
    %57 = arith.mulf %55, %56 : vector<1x16xf32>
    %58 = arith.subf %18, %24 : vector<1x16xf32>
    %cst_20 = arith.constant 1.250000e-01 : f32
    %59 = vector.broadcast %cst_20 : f32 to vector<1x16xf32>
    %60 = arith.mulf %58, %59 : vector<1x16xf32>
    %61 = arith.addf %16, %26 : vector<1x16xf32>
    %cst_21 = arith.constant 1.250000e-01 : f32
    %62 = vector.broadcast %cst_21 : f32 to vector<1x16xf32>
    %63 = arith.mulf %61, %62 : vector<1x16xf32>
    %64 = arith.subf %16, %26 : vector<1x16xf32>
    %cst_22 = arith.constant 1.250000e-01 : f32
    %65 = vector.broadcast %cst_22 : f32 to vector<1x16xf32>
    %66 = arith.mulf %64, %65 : vector<1x16xf32>
    %67 = arith.addf %30, %36 : vector<1x16xf32>
    %cst_23 = arith.constant 1.250000e-01 : f32
    %68 = vector.broadcast %cst_23 : f32 to vector<1x16xf32>
    %69 = arith.mulf %67, %68 : vector<1x16xf32>
    %70 = arith.subf %30, %36 : vector<1x16xf32>
    %cst_24 = arith.constant 1.250000e-01 : f32
    %71 = vector.broadcast %cst_24 : f32 to vector<1x16xf32>
    %72 = arith.mulf %70, %71 : vector<1x16xf32>
    %73 = arith.addf %28, %38 : vector<1x16xf32>
    %cst_25 = arith.constant 1.250000e-01 : f32
    %74 = vector.broadcast %cst_25 : f32 to vector<1x16xf32>
    %75 = arith.mulf %73, %74 : vector<1x16xf32>
    %76 = arith.subf %28, %38 : vector<1x16xf32>
    %cst_26 = arith.constant 1.250000e-01 : f32
    %77 = vector.broadcast %cst_26 : f32 to vector<1x16xf32>
    %78 = arith.mulf %76, %77 : vector<1x16xf32>
    %79 = arith.addf %34, %40 : vector<1x16xf32>
    %cst_27 = arith.constant 1.250000e-01 : f32
    %80 = vector.broadcast %cst_27 : f32 to vector<1x16xf32>
    %81 = arith.mulf %79, %80 : vector<1x16xf32>
    %82 = arith.subf %34, %40 : vector<1x16xf32>
    %cst_28 = arith.constant 1.250000e-01 : f32
    %83 = vector.broadcast %cst_28 : f32 to vector<1x16xf32>
    %84 = arith.mulf %82, %83 : vector<1x16xf32>
    %85 = arith.addf %32, %42 : vector<1x16xf32>
    %cst_29 = arith.constant 1.250000e-01 : f32
    %86 = vector.broadcast %cst_29 : f32 to vector<1x16xf32>
    %87 = arith.mulf %85, %86 : vector<1x16xf32>
    %88 = arith.subf %32, %42 : vector<1x16xf32>
    %cst_30 = arith.constant 1.250000e-01 : f32
    %89 = vector.broadcast %cst_30 : f32 to vector<1x16xf32>
    %90 = arith.mulf %88, %89 : vector<1x16xf32>
    %91 = vector.shape_cast %54 : vector<1x16xf32> to vector<1x1x16xf32>
    %92 = vector.shape_cast %48 : vector<1x16xf32> to vector<1x1x16xf32>
    %93 = vector.shape_cast %66 : vector<1x16xf32> to vector<1x1x16xf32>
    %94 = vector.shape_cast %60 : vector<1x16xf32> to vector<1x1x16xf32>
    %95 = vector.shape_cast %48 : vector<1x16xf32> to vector<1x1x16xf32>
    %96 = vector.shape_cast %54 : vector<1x16xf32> to vector<1x1x16xf32>
    %97 = vector.shape_cast %60 : vector<1x16xf32> to vector<1x1x16xf32>
    %98 = vector.shape_cast %66 : vector<1x16xf32> to vector<1x1x16xf32>
    %99 = vector.shape_cast %78 : vector<1x16xf32> to vector<1x1x16xf32>
    %100 = vector.shape_cast %72 : vector<1x16xf32> to vector<1x1x16xf32>
    %101 = vector.shape_cast %90 : vector<1x16xf32> to vector<1x1x16xf32>
    %102 = vector.shape_cast %84 : vector<1x16xf32> to vector<1x1x16xf32>
    %103 = vector.shape_cast %72 : vector<1x16xf32> to vector<1x1x16xf32>
    %104 = vector.shape_cast %78 : vector<1x16xf32> to vector<1x1x16xf32>
    %105 = vector.shape_cast %84 : vector<1x16xf32> to vector<1x1x16xf32>
    %106 = vector.shape_cast %90 : vector<1x16xf32> to vector<1x1x16xf32>
    %107 = tpu.concatenate %91, %92, %93, %94, %95, %96, %97, %98, %99, %100, %101, %102, %103, %104, %105, %106 in 0 : vector<1x1x16xf32>, vector<1x1x16xf32>, vector<1x1x16xf32>, vector<1x1x16xf32>, vector<1x1x16xf32>, vector<1x1x16xf32>, vector<1x1x16xf32>, vector<1x1x16xf32>, vector<1x1x16xf32>, vector<1x1x16xf32>, vector<1x1x16xf32>, vector<1x1x16xf32>, vector<1x1x16xf32>, vector<1x1x16xf32>, vector<1x1x16xf32>, vector<1x1x16xf32> -> vector<16x1x16xf32>
    %c0_31 = arith.constant 0 : index
    %c0_32 = arith.constant 0 : index
    %c0_33 = arith.constant 0 : index
    %c0_34 = arith.constant 0 : index
    %c0_35 = arith.constant 0 : index
    %108 = vector.load %arg3[%c0_31, %c0_32, %c0_33, %c0_34, %c0_35] : memref<1x5x16x1x16xf32, #tpu.memory_space<vmem>>, vector<1x1x16x1x16xf32>
    %109 = vector.shape_cast %108 : vector<1x1x16x1x16xf32> to vector<16x1x16xf32>
    %110 = vector.shape_cast %107 : vector<16x1x16xf32> to vector<1x1x16x1x16xf32>
    tpu.vector_store %arg3[%c0_31, %c0_32, %c0_33, %c0_34, %c0_35], %110 {strides = array<i32>} : memref<1x5x16x1x16xf32, #tpu.memory_space<vmem>>, vector<1x1x16x1x16xf32>,
    %111 = arith.addf %45, %45 : vector<1x16xf32>
    %cst_36 = arith.constant 5.000000e-01 : f32
    %112 = vector.broadcast %cst_36 : f32 to vector<1x16xf32>
    %113 = arith.mulf %111, %112 : vector<1x16xf32>
    %114 = arith.addf %51, %51 : vector<1x16xf32>
    %cst_37 = arith.constant 5.000000e-01 : f32
    %115 = vector.broadcast %cst_37 : f32 to vector<1x16xf32>
    %116 = arith.mulf %114, %115 : vector<1x16xf32>
    %117 = arith.addf %57, %57 : vector<1x16xf32>
    %cst_38 = arith.constant 5.000000e-01 : f32
    %118 = vector.broadcast %cst_38 : f32 to vector<1x16xf32>
    %119 = arith.mulf %117, %118 : vector<1x16xf32>
    %120 = arith.addf %63, %63 : vector<1x16xf32>
    %cst_39 = arith.constant 5.000000e-01 : f32
    %121 = vector.broadcast %cst_39 : f32 to vector<1x16xf32>
    %122 = arith.mulf %120, %121 : vector<1x16xf32>
    %123 = arith.addf %69, %69 : vector<1x16xf32>
    %cst_40 = arith.constant 5.000000e-01 : f32
    %124 = vector.broadcast %cst_40 : f32 to vector<1x16xf32>
    %125 = arith.mulf %123, %124 : vector<1x16xf32>
    %126 = arith.addf %75, %75 : vector<1x16xf32>
    %cst_41 = arith.constant 5.000000e-01 : f32
    %127 = vector.broadcast %cst_41 : f32 to vector<1x16xf32>
    %128 = arith.mulf %126, %127 : vector<1x16xf32>
    %129 = arith.addf %81, %81 : vector<1x16xf32>
    %cst_42 = arith.constant 5.000000e-01 : f32
    %130 = vector.broadcast %cst_42 : f32 to vector<1x16xf32>
    %131 = arith.mulf %129, %130 : vector<1x16xf32>
    %132 = arith.addf %87, %87 : vector<1x16xf32>
    %cst_43 = arith.constant 5.000000e-01 : f32
    %133 = vector.broadcast %cst_43 : f32 to vector<1x16xf32>
    %134 = arith.mulf %132, %133 : vector<1x16xf32>
    %135 = arith.addf %119, %125 : vector<1x16xf32>
    %cst_44 = arith.constant 5.000000e-01 : f32
    %136 = vector.broadcast %cst_44 : f32 to vector<1x16xf32>
    %137 = arith.mulf %135, %136 : vector<1x16xf32>
    %138 = arith.subf %119, %125 : vector<1x16xf32>
    %cst_45 = arith.constant 5.000000e-01 : f32
    %139 = vector.broadcast %cst_45 : f32 to vector<1x16xf32>
    %140 = arith.mulf %138, %139 : vector<1x16xf32>
    %141 = arith.addf %113, %131 : vector<1x16xf32>
    %cst_46 = arith.constant 5.000000e-01 : f32
    %142 = vector.broadcast %cst_46 : f32 to vector<1x16xf32>
    %143 = arith.mulf %141, %142 : vector<1x16xf32>
    %144 = arith.subf %113, %131 : vector<1x16xf32>
    %cst_47 = arith.constant 5.000000e-01 : f32
    %145 = vector.broadcast %cst_47 : f32 to vector<1x16xf32>
    %146 = arith.mulf %144, %145 : vector<1x16xf32>
    %147 = arith.addf %116, %134 : vector<1x16xf32>
    %cst_48 = arith.constant 5.000000e-01 : f32
    %148 = vector.broadcast %cst_48 : f32 to vector<1x16xf32>
    %149 = arith.mulf %147, %148 : vector<1x16xf32>
    %150 = arith.subf %116, %134 : vector<1x16xf32>
    %cst_49 = arith.constant 5.000000e-01 : f32
    %151 = vector.broadcast %cst_49 : f32 to vector<1x16xf32>
    %152 = arith.mulf %150, %151 : vector<1x16xf32>
    %153 = arith.addf %122, %128 : vector<1x16xf32>
    %cst_50 = arith.constant 5.000000e-01 : f32
    %154 = vector.broadcast %cst_50 : f32 to vector<1x16xf32>
    %155 = arith.mulf %153, %154 : vector<1x16xf32>
    %156 = arith.subf %122, %128 : vector<1x16xf32>
    %cst_51 = arith.constant 5.000000e-01 : f32
    %157 = vector.broadcast %cst_51 : f32 to vector<1x16xf32>
    %158 = arith.mulf %156, %157 : vector<1x16xf32>
    %159 = vector.shape_cast %152 : vector<1x16xf32> to vector<1x1x16xf32>
    %160 = vector.shape_cast %146 : vector<1x16xf32> to vector<1x1x16xf32>
    %161 = vector.shape_cast %158 : vector<1x16xf32> to vector<1x1x16xf32>
    %162 = vector.shape_cast %140 : vector<1x16xf32> to vector<1x1x16xf32>
    %163 = vector.shape_cast %146 : vector<1x16xf32> to vector<1x1x16xf32>
    %164 = vector.shape_cast %152 : vector<1x16xf32> to vector<1x1x16xf32>
    %165 = vector.shape_cast %140 : vector<1x16xf32> to vector<1x1x16xf32>
    %166 = vector.shape_cast %158 : vector<1x16xf32> to vector<1x1x16xf32>
    %167 = vector.shape_cast %158 : vector<1x16xf32> to vector<1x1x16xf32>
    %168 = vector.shape_cast %140 : vector<1x16xf32> to vector<1x1x16xf32>
    %169 = vector.shape_cast %152 : vector<1x16xf32> to vector<1x1x16xf32>
    %170 = vector.shape_cast %146 : vector<1x16xf32> to vector<1x1x16xf32>
    %171 = vector.shape_cast %140 : vector<1x16xf32> to vector<1x1x16xf32>
    %172 = vector.shape_cast %158 : vector<1x16xf32> to vector<1x1x16xf32>
    %173 = vector.shape_cast %146 : vector<1x16xf32> to vector<1x1x16xf32>
    %174 = vector.shape_cast %152 : vector<1x16xf32> to vector<1x1x16xf32>
    %175 = tpu.concatenate %159, %160, %161, %162, %163, %164, %165, %166, %167, %168, %169, %170, %171, %172, %173, %174 in 0 : vector<1x1x16xf32>, vector<1x1x16xf32>, vector<1x1x16xf32>, vector<1x1x16xf32>, vector<1x1x16xf32>, vector<1x1x16xf32>, vector<1x1x16xf32>, vector<1x1x16xf32>, vector<1x1x16xf32>, vector<1x1x16xf32>, vector<1x1x16xf32>, vector<1x1x16xf32>, vector<1x1x16xf32>, vector<1x1x16xf32>, vector<1x1x16xf32>, vector<1x1x16xf32> -> vector<16x1x16xf32>
    %c0_52 = arith.constant 0 : index
    %c1_53 = arith.constant 1 : index
    %c0_54 = arith.constant 0 : index
    %c0_55 = arith.constant 0 : index
    %c0_56 = arith.constant 0 : index
    %176 = vector.load %arg3[%c0_52, %c1_53, %c0_54, %c0_55, %c0_56] : memref<1x5x16x1x16xf32, #tpu.memory_space<vmem>>, vector<1x1x16x1x16xf32>
    %177 = vector.shape_cast %176 : vector<1x1x16x1x16xf32> to vector<16x1x16xf32>
    %178 = vector.shape_cast %175 : vector<16x1x16xf32> to vector<1x1x16x1x16xf32>
    tpu.vector_store %arg3[%c0_52, %c1_53, %c0_54, %c0_55, %c0_56], %178 {strides = array<i32>} : memref<1x5x16x1x16xf32, #tpu.memory_space<vmem>>, vector<1x1x16x1x16xf32>,
    %179 = arith.addf %143, %143 : vector<1x16xf32>
    %cst_57 = arith.constant 5.000000e-01 : f32
    %180 = vector.broadcast %cst_57 : f32 to vector<1x16xf32>
    %181 = arith.mulf %179, %180 : vector<1x16xf32>
    %182 = arith.addf %149, %149 : vector<1x16xf32>
    %cst_58 = arith.constant 5.000000e-01 : f32
    %183 = vector.broadcast %cst_58 : f32 to vector<1x16xf32>
    %184 = arith.mulf %182, %183 : vector<1x16xf32>
    %185 = arith.addf %137, %137 : vector<1x16xf32>
    %cst_59 = arith.constant 5.000000e-01 : f32
    %186 = vector.broadcast %cst_59 : f32 to vector<1x16xf32>
    %187 = arith.mulf %185, %186 : vector<1x16xf32>
    %188 = arith.addf %155, %155 : vector<1x16xf32>
    %cst_60 = arith.constant 5.000000e-01 : f32
    %189 = vector.broadcast %cst_60 : f32 to vector<1x16xf32>
    %190 = arith.mulf %188, %189 : vector<1x16xf32>
    %191 = arith.addf %137, %137 : vector<1x16xf32>
    %cst_61 = arith.constant 5.000000e-01 : f32
    %192 = vector.broadcast %cst_61 : f32 to vector<1x16xf32>
    %193 = arith.mulf %191, %192 : vector<1x16xf32>
    %194 = arith.addf %155, %155 : vector<1x16xf32>
    %cst_62 = arith.constant 5.000000e-01 : f32
    %195 = vector.broadcast %cst_62 : f32 to vector<1x16xf32>
    %196 = arith.mulf %194, %195 : vector<1x16xf32>
    %197 = arith.addf %143, %143 : vector<1x16xf32>
    %cst_63 = arith.constant 5.000000e-01 : f32
    %198 = vector.broadcast %cst_63 : f32 to vector<1x16xf32>
    %199 = arith.mulf %197, %198 : vector<1x16xf32>
    %200 = arith.addf %149, %149 : vector<1x16xf32>
    %cst_64 = arith.constant 5.000000e-01 : f32
    %201 = vector.broadcast %cst_64 : f32 to vector<1x16xf32>
    %202 = arith.mulf %200, %201 : vector<1x16xf32>
    %203 = arith.addf %187, %193 : vector<1x16xf32>
    %cst_65 = arith.constant 5.000000e-01 : f32
    %204 = vector.broadcast %cst_65 : f32 to vector<1x16xf32>
    %205 = arith.mulf %203, %204 : vector<1x16xf32>
    %206 = arith.subf %187, %193 : vector<1x16xf32>
    %cst_66 = arith.constant 5.000000e-01 : f32
    %207 = vector.broadcast %cst_66 : f32 to vector<1x16xf32>
    %208 = arith.mulf %206, %207 : vector<1x16xf32>
    %209 = arith.addf %181, %199 : vector<1x16xf32>
    %cst_67 = arith.constant 5.000000e-01 : f32
    %210 = vector.broadcast %cst_67 : f32 to vector<1x16xf32>
    %211 = arith.mulf %209, %210 : vector<1x16xf32>
    %212 = arith.subf %181, %199 : vector<1x16xf32>
    %cst_68 = arith.constant 5.000000e-01 : f32
    %213 = vector.broadcast %cst_68 : f32 to vector<1x16xf32>
    %214 = arith.mulf %212, %213 : vector<1x16xf32>
    %215 = arith.addf %184, %202 : vector<1x16xf32>
    %cst_69 = arith.constant 5.000000e-01 : f32
    %216 = vector.broadcast %cst_69 : f32 to vector<1x16xf32>
    %217 = arith.mulf %215, %216 : vector<1x16xf32>
    %218 = arith.subf %184, %202 : vector<1x16xf32>
    %cst_70 = arith.constant 5.000000e-01 : f32
    %219 = vector.broadcast %cst_70 : f32 to vector<1x16xf32>
    %220 = arith.mulf %218, %219 : vector<1x16xf32>
    %221 = arith.addf %190, %196 : vector<1x16xf32>
    %cst_71 = arith.constant 5.000000e-01 : f32
    %222 = vector.broadcast %cst_71 : f32 to vector<1x16xf32>
    %223 = arith.mulf %221, %222 : vector<1x16xf32>
    %224 = arith.subf %190, %196 : vector<1x16xf32>
    %cst_72 = arith.constant 5.000000e-01 : f32
    %225 = vector.broadcast %cst_72 : f32 to vector<1x16xf32>
    %226 = arith.mulf %224, %225 : vector<1x16xf32>
    %227 = vector.shape_cast %220 : vector<1x16xf32> to vector<1x1x16xf32>
    %228 = vector.shape_cast %214 : vector<1x16xf32> to vector<1x1x16xf32>
    %229 = vector.shape_cast %226 : vector<1x16xf32> to vector<1x1x16xf32>
    %230 = vector.shape_cast %208 : vector<1x16xf32> to vector<1x1x16xf32>
    %231 = vector.shape_cast %214 : vector<1x16xf32> to vector<1x1x16xf32>
    %232 = vector.shape_cast %220 : vector<1x16xf32> to vector<1x1x16xf32>
    %233 = vector.shape_cast %208 : vector<1x16xf32> to vector<1x1x16xf32>
    %234 = vector.shape_cast %226 : vector<1x16xf32> to vector<1x1x16xf32>
    %235 = vector.shape_cast %226 : vector<1x16xf32> to vector<1x1x16xf32>
    %236 = vector.shape_cast %208 : vector<1x16xf32> to vector<1x1x16xf32>
    %237 = vector.shape_cast %220 : vector<1x16xf32> to vector<1x1x16xf32>
    %238 = vector.shape_cast %214 : vector<1x16xf32> to vector<1x1x16xf32>
    %239 = vector.shape_cast %208 : vector<1x16xf32> to vector<1x1x16xf32>
    %240 = vector.shape_cast %226 : vector<1x16xf32> to vector<1x1x16xf32>
    %241 = vector.shape_cast %214 : vector<1x16xf32> to vector<1x1x16xf32>
    %242 = vector.shape_cast %220 : vector<1x16xf32> to vector<1x1x16xf32>
    %243 = tpu.concatenate %227, %228, %229, %230, %231, %232, %233, %234, %235, %236, %237, %238, %239, %240, %241, %242 in 0 : vector<1x1x16xf32>, vector<1x1x16xf32>, vector<1x1x16xf32>, vector<1x1x16xf32>, vector<1x1x16xf32>, vector<1x1x16xf32>, vector<1x1x16xf32>, vector<1x1x16xf32>, vector<1x1x16xf32>, vector<1x1x16xf32>, vector<1x1x16xf32>, vector<1x1x16xf32>, vector<1x1x16xf32>, vector<1x1x16xf32>, vector<1x1x16xf32>, vector<1x1x16xf32> -> vector<16x1x16xf32>
    %c0_73 = arith.constant 0 : index
    %c2_74 = arith.constant 2 : index
    %c0_75 = arith.constant 0 : index
    %c0_76 = arith.constant 0 : index
    %c0_77 = arith.constant 0 : index
    %244 = vector.load %arg3[%c0_73, %c2_74, %c0_75, %c0_76, %c0_77] : memref<1x5x16x1x16xf32, #tpu.memory_space<vmem>>, vector<1x1x16x1x16xf32>
    %245 = vector.shape_cast %244 : vector<1x1x16x1x16xf32> to vector<16x1x16xf32>
    %246 = vector.shape_cast %243 : vector<16x1x16xf32> to vector<1x1x16x1x16xf32>
    tpu.vector_store %arg3[%c0_73, %c2_74, %c0_75, %c0_76, %c0_77], %246 {strides = array<i32>} : memref<1x5x16x1x16xf32, #tpu.memory_space<vmem>>, vector<1x1x16x1x16xf32>,
    %247 = arith.addf %211, %211 : vector<1x16xf32>
    %cst_78 = arith.constant 5.000000e-01 : f32
    %248 = vector.broadcast %cst_78 : f32 to vector<1x16xf32>
    %249 = arith.mulf %247, %248 : vector<1x16xf32>
    %250 = arith.addf %217, %217 : vector<1x16xf32>
    %cst_79 = arith.constant 5.000000e-01 : f32
    %251 = vector.broadcast %cst_79 : f32 to vector<1x16xf32>
    %252 = arith.mulf %250, %251 : vector<1x16xf32>
    %253 = arith.addf %205, %205 : vector<1x16xf32>
    %cst_80 = arith.constant 5.000000e-01 : f32
    %254 = vector.broadcast %cst_80 : f32 to vector<1x16xf32>
    %255 = arith.mulf %253, %254 : vector<1x16xf32>
    %256 = arith.addf %223, %223 : vector<1x16xf32>
    %cst_81 = arith.constant 5.000000e-01 : f32
    %257 = vector.broadcast %cst_81 : f32 to vector<1x16xf32>
    %258 = arith.mulf %256, %257 : vector<1x16xf32>
    %259 = arith.addf %205, %205 : vector<1x16xf32>
    %cst_82 = arith.constant 5.000000e-01 : f32
    %260 = vector.broadcast %cst_82 : f32 to vector<1x16xf32>
    %261 = arith.mulf %259, %260 : vector<1x16xf32>
    %262 = arith.addf %223, %223 : vector<1x16xf32>
    %cst_83 = arith.constant 5.000000e-01 : f32
    %263 = vector.broadcast %cst_83 : f32 to vector<1x16xf32>
    %264 = arith.mulf %262, %263 : vector<1x16xf32>
    %265 = arith.addf %211, %211 : vector<1x16xf32>
    %cst_84 = arith.constant 5.000000e-01 : f32
    %266 = vector.broadcast %cst_84 : f32 to vector<1x16xf32>
    %267 = arith.mulf %265, %266 : vector<1x16xf32>
    %268 = arith.addf %217, %217 : vector<1x16xf32>
    %cst_85 = arith.constant 5.000000e-01 : f32
    %269 = vector.broadcast %cst_85 : f32 to vector<1x16xf32>
    %270 = arith.mulf %268, %269 : vector<1x16xf32>
    %271 = arith.addf %255, %261 : vector<1x16xf32>
    %cst_86 = arith.constant 5.000000e-01 : f32
    %272 = vector.broadcast %cst_86 : f32 to vector<1x16xf32>
    %273 = arith.mulf %271, %272 : vector<1x16xf32>
    %274 = arith.subf %255, %261 : vector<1x16xf32>
    %cst_87 = arith.constant 5.000000e-01 : f32
    %275 = vector.broadcast %cst_87 : f32 to vector<1x16xf32>
    %276 = arith.mulf %274, %275 : vector<1x16xf32>
    %277 = arith.addf %249, %267 : vector<1x16xf32>
    %cst_88 = arith.constant 5.000000e-01 : f32
    %278 = vector.broadcast %cst_88 : f32 to vector<1x16xf32>
    %279 = arith.mulf %277, %278 : vector<1x16xf32>
    %280 = arith.subf %249, %267 : vector<1x16xf32>
    %cst_89 = arith.constant 5.000000e-01 : f32
    %281 = vector.broadcast %cst_89 : f32 to vector<1x16xf32>
    %282 = arith.mulf %280, %281 : vector<1x16xf32>
    %283 = arith.addf %252, %270 : vector<1x16xf32>
    %cst_90 = arith.constant 5.000000e-01 : f32
    %284 = vector.broadcast %cst_90 : f32 to vector<1x16xf32>
    %285 = arith.mulf %283, %284 : vector<1x16xf32>
    %286 = arith.subf %252, %270 : vector<1x16xf32>
    %cst_91 = arith.constant 5.000000e-01 : f32
    %287 = vector.broadcast %cst_91 : f32 to vector<1x16xf32>
    %288 = arith.mulf %286, %287 : vector<1x16xf32>
    %289 = arith.addf %258, %264 : vector<1x16xf32>
    %cst_92 = arith.constant 5.000000e-01 : f32
    %290 = vector.broadcast %cst_92 : f32 to vector<1x16xf32>
    %291 = arith.mulf %289, %290 : vector<1x16xf32>
    %292 = arith.subf %258, %264 : vector<1x16xf32>
    %cst_93 = arith.constant 5.000000e-01 : f32
    %293 = vector.broadcast %cst_93 : f32 to vector<1x16xf32>
    %294 = arith.mulf %292, %293 : vector<1x16xf32>
    %295 = vector.shape_cast %288 : vector<1x16xf32> to vector<1x1x16xf32>
    %296 = vector.shape_cast %282 : vector<1x16xf32> to vector<1x1x16xf32>
    %297 = vector.shape_cast %294 : vector<1x16xf32> to vector<1x1x16xf32>
    %298 = vector.shape_cast %276 : vector<1x16xf32> to vector<1x1x16xf32>
    %299 = vector.shape_cast %282 : vector<1x16xf32> to vector<1x1x16xf32>
    %300 = vector.shape_cast %288 : vector<1x16xf32> to vector<1x1x16xf32>
    %301 = vector.shape_cast %276 : vector<1x16xf32> to vector<1x1x16xf32>
    %302 = vector.shape_cast %294 : vector<1x16xf32> to vector<1x1x16xf32>
    %303 = vector.shape_cast %294 : vector<1x16xf32> to vector<1x1x16xf32>
    %304 = vector.shape_cast %276 : vector<1x16xf32> to vector<1x1x16xf32>
    %305 = vector.shape_cast %288 : vector<1x16xf32> to vector<1x1x16xf32>
    %306 = vector.shape_cast %282 : vector<1x16xf32> to vector<1x1x16xf32>
    %307 = vector.shape_cast %276 : vector<1x16xf32> to vector<1x1x16xf32>
    %308 = vector.shape_cast %294 : vector<1x16xf32> to vector<1x1x16xf32>
    %309 = vector.shape_cast %282 : vector<1x16xf32> to vector<1x1x16xf32>
    %310 = vector.shape_cast %288 : vector<1x16xf32> to vector<1x1x16xf32>
    %311 = tpu.concatenate %295, %296, %297, %298, %299, %300, %301, %302, %303, %304, %305, %306, %307, %308, %309, %310 in 0 : vector<1x1x16xf32>, vector<1x1x16xf32>, vector<1x1x16xf32>, vector<1x1x16xf32>, vector<1x1x16xf32>, vector<1x1x16xf32>, vector<1x1x16xf32>, vector<1x1x16xf32>, vector<1x1x16xf32>, vector<1x1x16xf32>, vector<1x1x16xf32>, vector<1x1x16xf32>, vector<1x1x16xf32>, vector<1x1x16xf32>, vector<1x1x16xf32>, vector<1x1x16xf32> -> vector<16x1x16xf32>
    %c0_94 = arith.constant 0 : index
    %c3_95 = arith.constant 3 : index
    %c0_96 = arith.constant 0 : index
    %c0_97 = arith.constant 0 : index
    %c0_98 = arith.constant 0 : index
    %312 = vector.load %arg3[%c0_94, %c3_95, %c0_96, %c0_97, %c0_98] : memref<1x5x16x1x16xf32, #tpu.memory_space<vmem>>, vector<1x1x16x1x16xf32>
    %313 = vector.shape_cast %312 : vector<1x1x16x1x16xf32> to vector<16x1x16xf32>
    %314 = vector.shape_cast %311 : vector<16x1x16xf32> to vector<1x1x16x1x16xf32>
    tpu.vector_store %arg3[%c0_94, %c3_95, %c0_96, %c0_97, %c0_98], %314 {strides = array<i32>} : memref<1x5x16x1x16xf32, #tpu.memory_space<vmem>>, vector<1x1x16x1x16xf32>,
    %315 = vector.shape_cast %285 : vector<1x16xf32> to vector<1x1x16xf32>
    %316 = vector.shape_cast %279 : vector<1x16xf32> to vector<1x1x16xf32>
    %317 = vector.shape_cast %291 : vector<1x16xf32> to vector<1x1x16xf32>
    %318 = vector.shape_cast %273 : vector<1x16xf32> to vector<1x1x16xf32>
    %319 = vector.shape_cast %279 : vector<1x16xf32> to vector<1x1x16xf32>
    %320 = vector.shape_cast %285 : vector<1x16xf32> to vector<1x1x16xf32>
    %321 = vector.shape_cast %273 : vector<1x16xf32> to vector<1x1x16xf32>
    %322 = vector.shape_cast %291 : vector<1x16xf32> to vector<1x1x16xf32>
    %323 = vector.shape_cast %291 : vector<1x16xf32> to vector<1x1x16xf32>
    %324 = vector.shape_cast %273 : vector<1x16xf32> to vector<1x1x16xf32>
    %325 = vector.shape_cast %285 : vector<1x16xf32> to vector<1x1x16xf32>
    %326 = vector.shape_cast %279 : vector<1x16xf32> to vector<1x1x16xf32>
    %327 = vector.shape_cast %273 : vector<1x16xf32> to vector<1x1x16xf32>
    %328 = vector.shape_cast %291 : vector<1x16xf32> to vector<1x1x16xf32>
    %329 = vector.shape_cast %279 : vector<1x16xf32> to vector<1x1x16xf32>
    %330 = vector.shape_cast %285 : vector<1x16xf32> to vector<1x1x16xf32>
    %331 = tpu.concatenate %315, %316, %317, %318, %319, %320, %321, %322, %323, %324, %325, %326, %327, %328, %329, %330 in 0 : vector<1x1x16xf32>, vector<1x1x16xf32>, vector<1x1x16xf32>, vector<1x1x16xf32>, vector<1x1x16xf32>, vector<1x1x16xf32>, vector<1x1x16xf32>, vector<1x1x16xf32>, vector<1x1x16xf32>, vector<1x1x16xf32>, vector<1x1x16xf32>, vector<1x1x16xf32>, vector<1x1x16xf32>, vector<1x1x16xf32>, vector<1x1x16xf32>, vector<1x1x16xf32> -> vector<16x1x16xf32>
    %c0_99 = arith.constant 0 : index
    %c4 = arith.constant 4 : index
    %c0_100 = arith.constant 0 : index
    %c0_101 = arith.constant 0 : index
    %c0_102 = arith.constant 0 : index
    %332 = vector.load %arg3[%c0_99, %c4, %c0_100, %c0_101, %c0_102] : memref<1x5x16x1x16xf32, #tpu.memory_space<vmem>>, vector<1x1x16x1x16xf32>
    %333 = vector.shape_cast %332 : vector<1x1x16x1x16xf32> to vector<16x1x16xf32>
    %334 = vector.shape_cast %331 : vector<16x1x16xf32> to vector<1x1x16x1x16xf32>
    tpu.vector_store %arg3[%c0_99, %c4, %c0_100, %c0_101, %c0_102], %334 {strides = array<i32>} : memref<1x5x16x1x16xf32, #tpu.memory_space<vmem>>, vector<1x1x16x1x16xf32>,
    return
  }
  func.func @transform_0(%arg0: i32, %arg1: i32) -> (i32, i32, i32, i32, i32) {
    %c0_i32 = arith.constant 0 : i32
    %c0_i32_0 = arith.constant 0 : i32
    %c0_i32_1 = arith.constant 0 : i32
    %c0_i32_2 = arith.constant 0 : i32
    return %arg0, %c0_i32, %c0_i32_0, %arg1, %c0_i32_1 : i32, i32, i32, i32, i32
  }
  func.func @transform_1(%arg0: i32, %arg1: i32) -> (i32, i32, i32, i32, i32) {
    %c0_i32 = arith.constant 0 : i32
    %c0_i32_0 = arith.constant 0 : i32
    %c0_i32_1 = arith.constant 0 : i32
    %c0_i32_2 = arith.constant 0 : i32
    return %arg0, %c0_i32, %c0_i32_0, %arg1, %c0_i32_1 : i32, i32, i32, i32, i32
  }
}

</mosaic_0001>

<bundles_post_ra>
// kernel: tpu_custom_call.1
= control target key start
LH: loop header
LB: loop body
LE: loop exit
PB: predicated region body
PF: predicated region fallthrough
CT: control target
= control target key end

     0   :  { %6 = vsyncpa [#allocation3], 0  ;;  %s1302_s0 = inlined_call_operand.hbm [shape: f32[2,4,16,1,16], index: 0, kind: input, shape index: {}]   ;;  %s1303_s1 = inlined_call_operand.hbm [shape: f32[2,5,16,1,16], index: 1, kind: output, shape index: {}]  }
   0x1   :  { %8 = vsyncpa [#allocation3 + $0x1], 0 }
   0x2   :  { %9 = vsyncpa [#allocation4], 0 }
   0x3   :  { %11 = vsyncpa [#allocation4 + $0x1], 0  ;;  %s887_s6 = smov 0   ;;  %s889_s7 = smov 0  }
   0x4   :  { %s891_s8 = smov 0   ;;  %s893_s9 = smov 0  }
   0x5   :  { %s895_s10 = smov 0   ;;  %s897_s11 = smov 0  }
   0x6 LB: > { %s564_s12 = sadd.s32 4294967295, %s869_s11   ;;  %s565_s13 = sadd.s32 4294967294, %s869_s11   ;;  %s869_s11 = sphi %s897_s11, %s17_s11   ;;  %s865_s10 = sphi %s895_s10, %s1318_s10   ;;  %s861_s9 = sphi %s893_s9, %s1317_s9   ;;  %s857_s8 = sphi %s891_s8, %s1316_s8   ;;  %s853_s7 = sphi %s889_s7, %s1315_s7   ;;  %s849_s6 = sphi %s887_s6, %s1314_s6  }
   0x7   : > { %s29_s14 = sadd.s32 1, %s865_s10  ;;  %s38_s15 = sadd.s32 1, %s857_s8 }
   0x8   : > { %p31_p0 = scmp.ge.s32.totalorder %s29_s14, 2  ;;  %p45_p1 = scmp.ne.s32.totalorder %s857_s8, %s853_s7 }
   0x9   : > { %p46_p2 = scmp.eq.s32.totalorder %s869_s11, 0  ;;  %p51_p3 = scmp.ne.s32.totalorder %s853_s7, %s849_s6 }
   0xa   : > { %s1320_s14 = smov (%p31_p0, %s29_s14), 0  ;;  %p52_p5 = scmp.eq.s32.totalorder %s564_s12, 0 }
   0xb   : > { %p928_p4 = por %p46_p2, %p45_p1  ;;  %s33_s17 = ssub.s32 %s865_s10, %s1320_s14 }
   0xc   : > { %p77_p6 = scmp.eq.s32.totalorder %s564_s12, 1  ;;  %p36_p7 = scmp.eq.s32.totalorder %s33_s17, 0 }
   0xd   : > { %p934_p8 = por %p52_p5, %p51_p3  ;;  %p83_p10 = scmp.eq.s32.totalorder %s565_s13, 1 }
   0xe   : > { %p938_p9 = por %p77_p6, %p45_p1  ;;  %p703_p13 = scmp.lt.s32.totalorder %s869_s11, 2 }
   0xf   : > { %s943_s20 = scalar_select %p36_p7, %s857_s8, %s38_s15  }
  0x10   : > { %s1307_s19 = scalar_select %p938_p9, 1, 0 }
  0x11   : > { %p945_p11 = por %p83_p10, %p51_p3  ;;  %s103_s22 = sand.u32 1, %s857_s8  }
  0x12   : > { %s568_s23 = sshll.u32 %s103_s22, 6  ;;  %s688_s24 = sshll.u32 %s865_s10, 10 }
  0x13   : > { %s1308_s21 = scalar_select %p945_p11, 1, 0 }
  0x14   : > { %s956_s27 = scalar_lea.hbm %s1302_s0, %s688_s24  ;;  %s107_s28 = scalar_lea.vmem [#allocation2], %s568_s23 }
  0x15   : > { %s115_s29 = sshll.u32 %s107_s28, 4  ;;  %p962_p0 = pnand %p703_p13, %p928_p4  ;;  %s958_s29 = int_to_ptr.vmem [resolvable:$true] %s115_s29 }
  0x16   : > { %s967_s2 = scalar_lea.sflag [#allocation3], %s103_s22  ;;  %s757_s3 = scalar_lea.hbm %s956_s27, 1024 }
  0x17   : > { %p758_p2 = scmp.ne.s32.totalorder %s956_s27, %s757_s3  ;;  %p759_p3 = pneg %p962_p0 }
  0x18   : > { %s762_s12 = scalar_lea.hbm %s1302_s0, 2048  ;;  %p763_p4 = scmp.lt.u32.totalorder %s956_s27, %s1302_s0 }
  0x19   : > { %p760_p5 = pnand %p759_p3, %p758_p2  ;;  %p764_p7 = scmp.lt.u32.totalorder %s762_s12, %s757_s3 }
  0x1a   : > { %p766_p13 = scmp.lt.u32.totalorder %s757_s3, %s956_s27 }
  0x1b   : > { %p761_p6 = pneg %p760_p5  ;;  %p765_p10 = por %p764_p7, %p763_p4 }
  0x1d   : > { %p767_p12 = por %p766_p13, %p765_p10 }
  0x1f   : > { %p768_p1 = pnand %p767_p12, %p761_p6 }
  0x21   : > { %771 = shalt.err (!%p768_p1)
}
  0x22   : > { %s772_s16 = scalar_lea.vmem %s958_s29, 1024  ;;  %s871_s17 = smov [#allocation2]  }
  0x23   : > { %p773_p2 = scmp.ne.s32.totalorder %s958_s29, %s772_s16  ;;  %s777_s22 = sshll.u32 %s871_s17, 4  ;;  %s778_s22 = int_to_ptr.vmem [resolvable:$false] %s777_s22 }
  0x24   : > { %s779_s23 = scalar_lea.vmem %s778_s22, 2048  ;;  %p780_p9 = scmp.lt.s32.totalorder %s958_s29, %s778_s22 }
  0x25   : > { %p775_p5 = pnand %p773_p2, %p759_p3  ;;  %p781_p4 = scmp.lt.s32.totalorder %s779_s23, %s772_s16 }
  0x27   : > { %p776_p11 = pneg %p775_p5  ;;  %p782_p7 = por %p781_p4, %p780_p9 }
  0x29   : > { %p783_p10 = pnand %p782_p7, %p776_p11 }
  0x2b   : > { %786 = shalt.err (!%p783_p10)
}
  0x2c   : > { %s872_s24 = smov 16   ;;  %s873_s25 = smov 1  }
  0x2d   : > { %698 = dma.hbm_to_vmem [thread:$0]  (!%p962_p0), %s956_s27, 1024, %s958_s29, %s967_s2, %s872_s24, %s872_s24, %s873_s25  }
  0x2e   : > { %p123_p12 = scmp.lt.s32.totalorder %s869_s11, 3  ;;  %p1310_p1 = scmp.ge.s32.totalorder %s869_s11, 1 }
  0x30   : > { %p124_p3 = pnand %p1310_p1, %p123_p12 }
  0x31   : > { %s999_s26 = sand.u32 (!%p124_p3), 1, %s853_s7  }
  0x32   : > { %127 = sbr.rel (%p124_p3) target bundleno = 142 (0x8e), region = 24  ;;  %s572_s28 = sshll.u32 (!%p124_p3), %s999_s26, 6 }
  0x33   : > { %s130_s3 = scalar_lea.sflag (!%p124_p3), [#allocation3], %s999_s26  ;;  %s1003_s4 = scalar_lea.vmem (!%p124_p3), [#allocation2], %s572_s28 }
  0x39   : > { %840 = dma.done.wait (%p934_p8), %s130_s3, 1024  }
  0x3a   : > { %842 = vsyncadd (%p934_p8), %s130_s3, 4294966272  ;;  %s689_s27 = smul.u32 80, %s999_s26  ;;  %v152_v0 = vld [vmem:[%s1003_s4] sm:$0x1]  ;;  %v157_v1 = vld [vmem:[%s1003_s4 + $0x5] sm:$0x1] }
  0x3b   : > { %v573_v2 = vld [vmem:[%s1003_s4 + $0x10] sm:$0x1]  ;;  %v578_v3 = vld [vmem:[%s1003_s4 + $0x15] sm:$0x1]  ;;  %v589_v5 = vld [vmem:[%s1003_s4 + $0x20] sm:$0x1] }
  0x3c   : > { %v185_v4 = vadd.f32 %v573_v2, %v152_v0  ;;  %v594_v6 = vld [vmem:[%s1003_s4 + $0x25] sm:$0x1]  ;;  %vm299_vm0 = vcmask 122880   ;;  %v190_v7 = vadd.f32 %v578_v3, %v157_v1  ;;  %v605_v8 = vld [vmem:[%s1003_s4 + $0x30] sm:$0x1]  ;;  %s1053_s18 = scalar_lea.vmem [#allocation5], %s689_s27 }
  0x3d   : > { %v610_v9 = vld [vmem:[%s1003_s4 + $0x35] sm:$0x1]  ;;  %v153_v10 = vld [vmem:[%s1003_s4 + $0x1] sm:$0x1]  ;;  %v156_v12 = vld [vmem:[%s1003_s4 + $0x4] sm:$0x1] }
  0x3e   : > { %v218_v11 = vadd.f32 %v589_v5, %v185_v4  ;;  %v574_v13 = vld [vmem:[%s1003_s4 + $0x11] sm:$0x1]  ;;  %v577_v14 = vld [vmem:[%s1003_s4 + $0x14] sm:$0x1]  ;;  %v223_v15 = vadd.f32 %v594_v6, %v190_v7  ;;  %v590_v18 = vld [vmem:[%s1003_s4 + $0x21] sm:$0x1] }
  0x3f   : > { %v186_v16 = vadd.f32 %v574_v13, %v153_v10  ;;  %v189_v17 = vadd.f32 %v577_v14, %v156_v12  ;;  %v593_v19 = vld [vmem:[%s1003_s4 + $0x24] sm:$0x1]  ;;  %v606_v20 = vld [vmem:[%s1003_s4 + $0x31] sm:$0x1]  ;;  %v609_v21 = vld [vmem:[%s1003_s4 + $0x34] sm:$0x1] }
  0x40   : > { %v154_v22 = vld [vmem:[%s1003_s4 + $0x2] sm:$0x1]  ;;  %v159_v23 = vld [vmem:[%s1003_s4 + $0x7] sm:$0x1]  ;;  %v251_v24 = vadd.f32 %v605_v8, %v218_v11  ;;  %v256_v25 = vadd.f32 %v610_v9, %v223_v15  ;;  %v575_v28 = vld [vmem:[%s1003_s4 + $0x12] sm:$0x1] }
  0x41   : > { %v219_v26 = vadd.f32 %v590_v18, %v186_v16  ;;  %v222_v27 = vadd.f32 %v593_v19, %v189_v17  ;;  %v580_v29 = vld [vmem:[%s1003_s4 + $0x17] sm:$0x1]  ;;  %v591_v30 = vld [vmem:[%s1003_s4 + $0x22] sm:$0x1]  ;;  %v187_v31 = vadd.f32 %v575_v28, %v154_v22  ;;  %v596_v33 = vld [vmem:[%s1003_s4 + $0x27] sm:$0x1] }
  0x42   : > { %v192_v32 = vadd.f32 %v580_v29, %v159_v23  ;;  %v607_v34 = vld [vmem:[%s1003_s4 + $0x32] sm:$0x1]  ;;  %v612_v35 = vld [vmem:[%s1003_s4 + $0x37] sm:$0x1]  ;;  %v273_v36 = vsub.f32 %v251_v24, %v256_v25  ;;  %v155_v39 = vld [vmem:[%s1003_s4 + $0x3] sm:$0x1]  ;;  %v271_v59 = vadd.f32 %v256_v25, %v251_v24 }
  0x43   : > { %v1034_v37 = vadd.f32 %v606_v20, %v219_v26  ;;  %v1036_v38 = vadd.f32 %v609_v21, %v222_v27  ;;  %v158_v40 = vld [vmem:[%s1003_s4 + $0x6] sm:$0x1]  ;;  %v576_v41 = vld [vmem:[%s1003_s4 + $0x13] sm:$0x1]  ;;  %v220_v42 = vadd.f32 %v591_v30, %v187_v31  ;;  %v579_v44 = vld [vmem:[%s1003_s4 + $0x16] sm:$0x1] }
  0x44   : > { %v225_v43 = vadd.f32 %v596_v33, %v192_v32  ;;  %v188_v45 = vadd.f32 %v576_v41, %v155_v39  ;;  %v592_v46 = vld [vmem:[%s1003_s4 + $0x23] sm:$0x1]  ;;  %v595_v47 = vld [vmem:[%s1003_s4 + $0x26] sm:$0x1]  ;;  %v274_v48 = vmul.f32 0.125, %v273_v36  ;;  %v191_v50 = vadd.f32 %v579_v44, %v158_v40  ;;  %s690_s29 = smul.u32 1280, %s861_s9 }
  0x45   : > { %v269_v49 = vsub.f32 %v1034_v37, %v1036_v38  ;;  %v608_v51 = vld [vmem:[%s1003_s4 + $0x33] sm:$0x1]  ;;  %v611_v52 = vld [vmem:[%s1003_s4 + $0x36] sm:$0x1]  ;;  %v253_v53 = vadd.f32 %v607_v34, %v220_v42  ;;  %v160_v56 = vld [vmem:[%s1003_s4 + $0x8] sm:$0x1] }
  0x46   : > { %v258_v54 = vadd.f32 %v612_v35, %v225_v43  ;;  %v221_v55 = vadd.f32 %v592_v46, %v188_v45  ;;  %v165_v57 = vld [vmem:[%s1003_s4 + $0xd] sm:$0x1]  ;;  %v581_v58 = vld [vmem:[%s1003_s4 + $0x18] sm:$0x1]  ;;  %300 = vst.msk [vmem:[%s1053_s18] sm:$0x1] %vm299_vm0, %v274_v48  ;;  %v224_v61 = vadd.f32 %v595_v47, %v191_v50  ;;  %v267_v35 = vadd.f32 %v1036_v38, %v1034_v37  ;;  %s1235_s5 = scalar_lea.hbm %s1303_s1, %s690_s29 }
  0x47   : > { %305 = vst.msk [vmem:[%s1053_s18 + $0x5] sm:$0x1] %vm299_vm0, %v274_v48  ;;  %v270_v60 = vmul.f32 0.125, %v269_v49  ;;  %v586_v62 = vld [vmem:[%s1003_s4 + $0x1d] sm:$0x1]  ;;  %v193_v63 = vadd.f32 %v581_v58, %v160_v56  ;;  %v272_v17 = vmul.f32 0.125, %v271_v59 }
  0x48   : > { %v597_v0 = vld [vmem:[%s1003_s4 + $0x28] sm:$0x1]  ;;  %v281_v1 = vsub.f32 %v253_v53, %v258_v54  ;;  %v198_v2 = vadd.f32 %v586_v62, %v165_v57  ;;  %v602_v3 = vld [vmem:[%s1003_s4 + $0x2d] sm:$0x1]  ;;  %v613_v4 = vld [vmem:[%s1003_s4 + $0x38] sm:$0x1]  ;;  %v254_v6 = vadd.f32 %v608_v51, %v221_v55  ;;  %v257_v7 = vadd.f32 %v611_v52, %v224_v61 }
  0x49   : > { %v618_v5 = vld [vmem:[%s1003_s4 + $0x3d] sm:$0x1]  ;;  %301 = vst.msk [vmem:[%s1053_s18 + $0x1] sm:$0x1] %vm299_vm0, %v270_v60  ;;  %304 = vst.msk [vmem:[%s1053_s18 + $0x4] sm:$0x1] %vm299_vm0, %v270_v60  ;;  %v226_v8 = vadd.f32 %v597_v0, %v193_v63  ;;  %v279_v29 = vadd.f32 %v258_v54, %v253_v53  ;;  %v318_v38 = vadd.f32 %v272_v17, %v272_v17 }
  0x4a   : > { %v161_v9 = vld [vmem:[%s1003_s4 + $0x9] sm:$0x1]  ;;  %v164_v10 = vld [vmem:[%s1003_s4 + $0xc] sm:$0x1]  ;;  %v582_v11 = vld [vmem:[%s1003_s4 + $0x19] sm:$0x1]  ;;  %v231_v13 = vadd.f32 %v602_v3, %v198_v2  ;;  %v277_v18 = vsub.f32 %v254_v6, %v257_v7  ;;  %v275_v49 = vadd.f32 %v257_v7, %v254_v6 }
  0x4b   : > { %v282_v12 = vmul.f32 0.125, %v281_v1  ;;  %v585_v14 = vld [vmem:[%s1003_s4 + $0x1c] sm:$0x1]  ;;  %v194_v15 = vadd.f32 %v582_v11, %v161_v9  ;;  %v598_v16 = vld [vmem:[%s1003_s4 + $0x29] sm:$0x1]  ;;  %v259_v19 = vadd.f32 %v613_v4, %v226_v8  ;;  %v280_v55 = vmul.f32 0.125, %v279_v29 }
  0x4c   : > { %v197_v20 = vadd.f32 %v585_v14, %v164_v10  ;;  %v601_v21 = vld [vmem:[%s1003_s4 + $0x2c] sm:$0x1]  ;;  %v614_v22 = vld [vmem:[%s1003_s4 + $0x39] sm:$0x1]  ;;  %v617_v23 = vld [vmem:[%s1003_s4 + $0x3c] sm:$0x1]  ;;  %v264_v24 = vadd.f32 %v618_v5, %v231_v13 }
  0x4d   : > { %302 = vst.msk [vmem:[%s1053_s18 + $0x2] sm:$0x1] %vm299_vm0, %v282_v12  ;;  %307 = vst.msk [vmem:[%s1053_s18 + $0x7] sm:$0x1] %vm299_vm0, %v282_v12  ;;  %v227_v25 = vadd.f32 %v598_v16, %v194_v15  ;;  %v162_v26 = vld [vmem:[%s1003_s4 + $0xa] sm:$0x1]  ;;  %v322_v5 = vadd.f32 %v280_v55, %v280_v55 }
  0x4e   : > { %v167_v27 = vld [vmem:[%s1003_s4 + $0xf] sm:$0x1]  ;;  %v583_v28 = vld [vmem:[%s1003_s4 + $0x1a] sm:$0x1]  ;;  %v278_v30 = vmul.f32 0.125, %v277_v18  ;;  %v230_v31 = vadd.f32 %v601_v21, %v197_v20  ;;  %v289_v36 = vsub.f32 %v259_v19, %v264_v24  ;;  %v287_v44 = vadd.f32 %v264_v24, %v259_v19  ;;  %s479_s30 = sshll.u32 %s1053_s18, 4  ;;  %s1237_s30 = int_to_ptr.vmem [resolvable:$true] %s479_s30 }
  0x4f   : > { %v588_v32 = vld [vmem:[%s1003_s4 + $0x1f] sm:$0x1]  ;;  %v195_v33 = vadd.f32 %v583_v28, %v162_v26  ;;  %v599_v34 = vld [vmem:[%s1003_s4 + $0x2a] sm:$0x1]  ;;  %v260_v39 = vadd.f32 %v614_v22, %v227_v25  ;;  %v604_v41 = vld [vmem:[%s1003_s4 + $0x2f] sm:$0x1] }
  0x50   : > { %v200_v40 = vadd.f32 %v588_v32, %v167_v27  ;;  %v615_v42 = vld [vmem:[%s1003_s4 + $0x3a] sm:$0x1]  ;;  %v620_v43 = vld [vmem:[%s1003_s4 + $0x3f] sm:$0x1]  ;;  %303 = vst.msk [vmem:[%s1053_s18 + $0x3] sm:$0x1] %vm299_vm0, %v278_v30  ;;  %v263_v45 = vadd.f32 %v617_v23, %v230_v31 }
  0x51   : > { %306 = vst.msk [vmem:[%s1053_s18 + $0x6] sm:$0x1] %vm299_vm0, %v278_v30  ;;  %v228_v46 = vadd.f32 %v599_v34, %v195_v33  ;;  %v163_v47 = vld [vmem:[%s1003_s4 + $0xb] sm:$0x1]  ;;  %v166_v48 = vld [vmem:[%s1003_s4 + $0xe] sm:$0x1] }
  0x52   : > { %v584_v37 = vld [vmem:[%s1003_s4 + $0x1b] sm:$0x1]  ;;  %v290_v50 = vmul.f32 0.125, %v289_v36  ;;  %v233_v51 = vadd.f32 %v604_v41, %v200_v40  ;;  %v587_v52 = vld [vmem:[%s1003_s4 + $0x1e] sm:$0x1]  ;;  %v285_v56 = vsub.f32 %v260_v39, %v263_v45  ;;  %v283_v61 = vadd.f32 %v263_v45, %v260_v39  ;;  %s465_s12 = scalar_lea.sflag [#allocation4], %s999_s26 }
  0x53   : > { %v196_v53 = vadd.f32 %v584_v37, %v163_v47  ;;  %v600_v54 = vld [vmem:[%s1003_s4 + $0x2b] sm:$0x1]  ;;  %v261_v57 = vadd.f32 %v615_v42, %v228_v46  ;;  %v199_v58 = vadd.f32 %v587_v52, %v166_v48  ;;  %v603_v59 = vld [vmem:[%s1003_s4 + $0x2e] sm:$0x1]  ;;  %v616_v60 = vld [vmem:[%s1003_s4 + $0x3b] sm:$0x1] }
  0x54   : > { %308 = vst.msk [vmem:[%s1053_s18 + $0x8] sm:$0x1] %vm299_vm0, %v290_v50  ;;  %313 = vst.msk [vmem:[%s1053_s18 + $0xd] sm:$0x1] %vm299_vm0, %v290_v50  ;;  %v266_v62 = vadd.f32 %v620_v43, %v233_v51  ;;  %v619_v0 = vld [vmem:[%s1003_s4 + $0x3e] sm:$0x1] }
  0x55   : > { %v229_v63 = vadd.f32 %v600_v54, %v196_v53  ;;  %v268_v1 = vmul.f32 0.125, %v267_v35  ;;  %v288_v2 = vmul.f32 0.125, %v287_v44  ;;  %v286_v3 = vmul.f32 0.125, %v285_v56  ;;  %s787_s13 = scalar_lea.vmem %s1237_s30, 1280  ;;  %p1311_p9 = scmp.ne.s32.totalorder %s1307_s19, 0 }
  0x56   : > { %v232_v4 = vadd.f32 %v603_v59, %v199_v58  ;;  %v276_v6 = vmul.f32 0.125, %v275_v49  ;;  %v297_v7 = vsub.f32 %v261_v57, %v266_v62  ;;  %v295_v9 = vadd.f32 %v266_v62, %v261_v57  ;;  %p788_p8 = scmp.ne.s32.totalorder %s1237_s30, %s787_s13  ;;  %s874_s15 = smov [#allocation5]  }
  0x57   : > { %v262_v8 = vadd.f32 %v616_v60, %v229_v63  ;;  %v326_v10 = vadd.f32 %v288_v2, %v288_v2  ;;  %309 = vst.msk [vmem:[%s1053_s18 + $0x9] sm:$0x1] %vm299_vm0, %v286_v3  ;;  %312 = vst.msk [vmem:[%s1053_s18 + $0xc] sm:$0x1] %vm299_vm0, %v286_v3  ;;  %v323_v12 = vmul.f32 0.5, %v322_v5  ;;  %v284_v13 = vmul.f32 0.125, %v283_v61 }
  0x58   : > { %v265_v11 = vadd.f32 %v619_v0, %v232_v4  ;;  %v320_v14 = vadd.f32 %v276_v6, %v276_v6  ;;  %v298_v15 = vmul.f32 0.125, %v297_v7  ;;  %v296_v16 = vmul.f32 0.125, %v295_v9  ;;  %p789_p11 = pnand %p788_p8, %p1311_p9  ;;  %s791_s16 = sshll.u32 %s874_s15, 4  ;;  %s792_s16 = int_to_ptr.vmem [resolvable:$false] %s791_s16 }
  0x59   : > { %v316_v17 = vadd.f32 %v268_v1, %v268_v1  ;;  %v327_v18 = vmul.f32 0.5, %v326_v10  ;;  %v324_v22 = vadd.f32 %v284_v13, %v284_v13  ;;  %v319_v23 = vmul.f32 0.5, %v318_v38  ;;  %s793_s17 = scalar_lea.vmem %s792_s16, 2560  ;;  %p794_p6 = scmp.lt.s32.totalorder %s1237_s30, %s792_s16 }
  0x5a   : > { %v293_v19 = vsub.f32 %v262_v8, %v265_v11  ;;  %v291_v20 = vadd.f32 %v265_v11, %v262_v8  ;;  %v321_v21 = vmul.f32 0.5, %v320_v14  ;;  %310 = vst.msk [vmem:[%s1053_s18 + $0xa] sm:$0x1] %vm299_vm0, %v298_v15  ;;  %315 = vst.msk [vmem:[%s1053_s18 + $0xf] sm:$0x1] %vm299_vm0, %v298_v15  ;;  %v330_v24 = vadd.f32 %v296_v16, %v296_v16  ;;  %p790_p0 = pneg %p789_p11  ;;  %p795_p13 = scmp.lt.s32.totalorder %s793_s17, %s787_s13 }
  0x5b   : > { %v346_v25 = vsub.f32 %v323_v12, %v327_v18  ;;  %v344_v26 = vadd.f32 %v327_v18, %v323_v12  ;;  %v325_v29 = vmul.f32 0.5, %v324_v22  ;;  %v317_v33 = vmul.f32 0.5, %v316_v17 }
  0x5c   : > { %v294_v27 = vmul.f32 0.125, %v293_v19  ;;  %v292_v28 = vmul.f32 0.125, %v291_v20  ;;  %v331_v30 = vmul.f32 0.5, %v330_v24  ;;  %p796_p2 = por %p795_p13, %p794_p6 }
  0x5d   : > { %v347_v31 = vmul.f32 0.5, %v346_v25  ;;  %v345_v32 = vmul.f32 0.5, %v344_v26  ;;  %v334_v35 = vsub.f32 %v321_v21, %v325_v29  ;;  %v332_v36 = vadd.f32 %v325_v29, %v321_v21 }
  0x5e   : > { %311 = vst.msk [vmem:[%s1053_s18 + $0xb] sm:$0x1] %vm299_vm0, %v294_v27  ;;  %314 = vst.msk [vmem:[%s1053_s18 + $0xe] sm:$0x1] %vm299_vm0, %v294_v27  ;;  %v328_v34 = vadd.f32 %v292_v28, %v292_v28  ;;  %v342_v39 = vsub.f32 %v319_v23, %v331_v30  ;;  %v340_v40 = vadd.f32 %v331_v30, %v319_v23  ;;  %p797_p5 = pnand %p796_p2, %p790_p0 }
  0x5f   : > { %623 = vst.msk [vmem:[%s1053_s18 + $0x12] sm:$0x1] %vm299_vm0, %v347_v31  ;;  %628 = vst.msk [vmem:[%s1053_s18 + $0x17] sm:$0x1] %vm299_vm0, %v347_v31  ;;  %v371_v41 = vadd.f32 %v345_v32, %v345_v32  ;;  %v335_v43 = vmul.f32 0.5, %v334_v35  ;;  %v333_v44 = vmul.f32 0.5, %v332_v36 }
  0x60   : > { %629 = vst.msk [vmem:[%s1053_s18 + $0x18] sm:$0x1] %vm299_vm0, %v347_v31  ;;  %634 = vst.msk [vmem:[%s1053_s18 + $0x1d] sm:$0x1] %vm299_vm0, %v347_v31  ;;  %v329_v42 = vmul.f32 0.5, %v328_v34  ;;  %v343_v45 = vmul.f32 0.5, %v342_v39 }
  0x61   : > { %v341_v46 = vmul.f32 0.5, %v340_v40  ;;  %v372_v47 = vmul.f32 0.5, %v371_v41  ;;  %624 = vst.msk [vmem:[%s1053_s18 + $0x13] sm:$0x1] %vm299_vm0, %v335_v43  ;;  %627 = vst.msk [vmem:[%s1053_s18 + $0x16] sm:$0x1] %vm299_vm0, %v335_v43  ;;  %v369_v38 = vadd.f32 %v333_v44, %v333_v44 }
  0x62   : > { %v338_v48 = vsub.f32 %v317_v33, %v329_v42  ;;  %630 = vst.msk [vmem:[%s1053_s18 + $0x19] sm:$0x1] %vm299_vm0, %v335_v43  ;;  %633 = vst.msk [vmem:[%s1053_s18 + $0x1c] sm:$0x1] %vm299_vm0, %v335_v43  ;;  %v336_v37 = vadd.f32 %v329_v42, %v317_v33 }
  0x63   : > { %621 = vst.msk [vmem:[%s1053_s18 + $0x10] sm:$0x1] %vm299_vm0, %v343_v45  ;;  %626 = vst.msk [vmem:[%s1053_s18 + $0x15] sm:$0x1] %vm299_vm0, %v343_v45  ;;  %v367_v49 = vadd.f32 %v341_v46, %v341_v46  ;;  %v387_v50 = vsub.f32 %v372_v47, %v372_v47  ;;  %v385_v51 = vadd.f32 %v372_v47, %v372_v47  ;;  %v370_v54 = vmul.f32 0.5, %v369_v38 }
  0x64   : > { %631 = vst.msk [vmem:[%s1053_s18 + $0x1a] sm:$0x1] %vm299_vm0, %v343_v45  ;;  %636 = vst.msk [vmem:[%s1053_s18 + $0x1f] sm:$0x1] %vm299_vm0, %v343_v45  ;;  %v339_v52 = vmul.f32 0.5, %v338_v48  ;;  %v337_v53 = vmul.f32 0.5, %v336_v37 }
  0x65   : > { %v368_v55 = vmul.f32 0.5, %v367_v49  ;;  %v388_v56 = vmul.f32 0.5, %v387_v50  ;;  %v386_v57 = vmul.f32 0.5, %v385_v51  ;;  %v375_v59 = vsub.f32 %v370_v54, %v370_v54 }
  0x66   : > { %622 = vst.msk [vmem:[%s1053_s18 + $0x11] sm:$0x1] %vm299_vm0, %v339_v52  ;;  %625 = vst.msk [vmem:[%s1053_s18 + $0x14] sm:$0x1] %vm299_vm0, %v339_v52  ;;  %v365_v58 = vadd.f32 %v337_v53, %v337_v53  ;;  %v373_v60 = vadd.f32 %v370_v54, %v370_v54 }
  0x67   : > { %632 = vst.msk [vmem:[%s1053_s18 + $0x1b] sm:$0x1] %vm299_vm0, %v339_v52  ;;  %635 = vst.msk [vmem:[%s1053_s18 + $0x1e] sm:$0x1] %vm299_vm0, %v339_v52  ;;  %v383_v61 = vsub.f32 %v368_v55, %v368_v55  ;;  %v381_v62 = vadd.f32 %v368_v55, %v368_v55  ;;  %v412_v63 = vadd.f32 %v386_v57, %v386_v57  ;;  %v376_v1 = vmul.f32 0.5, %v375_v59 }
  0x68   : > { %639 = vst.msk [vmem:[%s1053_s18 + $0x22] sm:$0x1] %vm299_vm0, %v388_v56  ;;  %644 = vst.msk [vmem:[%s1053_s18 + $0x27] sm:$0x1] %vm299_vm0, %v388_v56  ;;  %v366_v0 = vmul.f32 0.5, %v365_v58  ;;  %v374_v2 = vmul.f32 0.5, %v373_v60 }
  0x69   : > { %645 = vst.msk [vmem:[%s1053_s18 + $0x28] sm:$0x1] %vm299_vm0, %v388_v56  ;;  %650 = vst.msk [vmem:[%s1053_s18 + $0x2d] sm:$0x1] %vm299_vm0, %v388_v56  ;;  %v384_v3 = vmul.f32 0.5, %v383_v61  ;;  %v382_v4 = vmul.f32 0.5, %v381_v62 }
  0x6a   : > { %v413_v5 = vmul.f32 0.5, %v412_v63  ;;  %v379_v6 = vsub.f32 %v366_v0, %v366_v0  ;;  %640 = vst.msk [vmem:[%s1053_s18 + $0x23] sm:$0x1] %vm299_vm0, %v376_v1  ;;  %643 = vst.msk [vmem:[%s1053_s18 + $0x26] sm:$0x1] %vm299_vm0, %v376_v1  ;;  %v377_v7 = vadd.f32 %v366_v0, %v366_v0  ;;  %v410_v8 = vadd.f32 %v374_v2, %v374_v2 }
  0x6b   : > { %646 = vst.msk [vmem:[%s1053_s18 + $0x29] sm:$0x1] %vm299_vm0, %v376_v1  ;;  %649 = vst.msk [vmem:[%s1053_s18 + $0x2c] sm:$0x1] %vm299_vm0, %v376_v1  ;;  %v408_v9 = vadd.f32 %v382_v4, %v382_v4 }
  0x6c   : > { %637 = vst.msk [vmem:[%s1053_s18 + $0x20] sm:$0x1] %vm299_vm0, %v384_v3  ;;  %642 = vst.msk [vmem:[%s1053_s18 + $0x25] sm:$0x1] %vm299_vm0, %v384_v3  ;;  %v428_v10 = vsub.f32 %v413_v5, %v413_v5  ;;  %v426_v11 = vadd.f32 %v413_v5, %v413_v5  ;;  %v380_v12 = vmul.f32 0.5, %v379_v6  ;;  %v378_v13 = vmul.f32 0.5, %v377_v7 }
  0x6d   : > { %647 = vst.msk [vmem:[%s1053_s18 + $0x2a] sm:$0x1] %vm299_vm0, %v384_v3  ;;  %652 = vst.msk [vmem:[%s1053_s18 + $0x2f] sm:$0x1] %vm299_vm0, %v384_v3  ;;  %v411_v14 = vmul.f32 0.5, %v410_v8  ;;  %v409_v15 = vmul.f32 0.5, %v408_v9 }
  0x6e   : > { %v429_v16 = vmul.f32 0.5, %v428_v10  ;;  %v427_v17 = vmul.f32 0.5, %v426_v11  ;;  %638 = vst.msk [vmem:[%s1053_s18 + $0x21] sm:$0x1] %vm299_vm0, %v380_v12  ;;  %641 = vst.msk [vmem:[%s1053_s18 + $0x24] sm:$0x1] %vm299_vm0, %v380_v12  ;;  %v406_v18 = vadd.f32 %v378_v13, %v378_v13 }
  0x6f   : > { %648 = vst.msk [vmem:[%s1053_s18 + $0x2b] sm:$0x1] %vm299_vm0, %v380_v12  ;;  %651 = vst.msk [vmem:[%s1053_s18 + $0x2e] sm:$0x1] %vm299_vm0, %v380_v12  ;;  %v416_v19 = vsub.f32 %v411_v14, %v411_v14  ;;  %v414_v20 = vadd.f32 %v411_v14, %v411_v14  ;;  %v424_v21 = vsub.f32 %v409_v15, %v409_v15 }
  0x70   : > { %655 = vst.msk [vmem:[%s1053_s18 + $0x32] sm:$0x1] %vm299_vm0, %v429_v16  ;;  %660 = vst.msk [vmem:[%s1053_s18 + $0x37] sm:$0x1] %vm299_vm0, %v429_v16  ;;  %v422_v22 = vadd.f32 %v409_v15, %v409_v15  ;;  %v407_v23 = vmul.f32 0.5, %v406_v18 }
  0x71   : > { %661 = vst.msk [vmem:[%s1053_s18 + $0x38] sm:$0x1] %vm299_vm0, %v429_v16  ;;  %666 = vst.msk [vmem:[%s1053_s18 + $0x3d] sm:$0x1] %vm299_vm0, %v429_v16  ;;  %v417_v24 = vmul.f32 0.5, %v416_v19  ;;  %v415_v25 = vmul.f32 0.5, %v414_v20 }
  0x72   : > { %671 = vst.msk [vmem:[%s1053_s18 + $0x42] sm:$0x1] %vm299_vm0, %v427_v17  ;;  %676 = vst.msk [vmem:[%s1053_s18 + $0x47] sm:$0x1] %vm299_vm0, %v427_v17  ;;  %v425_v26 = vmul.f32 0.5, %v424_v21  ;;  %v423_v27 = vmul.f32 0.5, %v422_v22  ;;  %v420_v28 = vsub.f32 %v407_v23, %v407_v23  ;;  %v418_v29 = vadd.f32 %v407_v23, %v407_v23 }
  0x73   : > { %677 = vst.msk [vmem:[%s1053_s18 + $0x48] sm:$0x1] %vm299_vm0, %v427_v17  ;;  %682 = vst.msk [vmem:[%s1053_s18 + $0x4d] sm:$0x1] %vm299_vm0, %v427_v17 }
  0x74   : > { %656 = vst.msk [vmem:[%s1053_s18 + $0x33] sm:$0x1] %vm299_vm0, %v417_v24  ;;  %659 = vst.msk [vmem:[%s1053_s18 + $0x36] sm:$0x1] %vm299_vm0, %v417_v24  ;;  %v421_v30 = vmul.f32 0.5, %v420_v28  ;;  %v419_v31 = vmul.f32 0.5, %v418_v29 }
  0x75   : > { %662 = vst.msk [vmem:[%s1053_s18 + $0x39] sm:$0x1] %vm299_vm0, %v417_v24  ;;  %665 = vst.msk [vmem:[%s1053_s18 + $0x3c] sm:$0x1] %vm299_vm0, %v417_v24 }
  0x76   : > { %672 = vst.msk [vmem:[%s1053_s18 + $0x43] sm:$0x1] %vm299_vm0, %v415_v25  ;;  %675 = vst.msk [vmem:[%s1053_s18 + $0x46] sm:$0x1] %vm299_vm0, %v415_v25 }
  0x77   : > { %678 = vst.msk [vmem:[%s1053_s18 + $0x49] sm:$0x1] %vm299_vm0, %v415_v25  ;;  %681 = vst.msk [vmem:[%s1053_s18 + $0x4c] sm:$0x1] %vm299_vm0, %v415_v25 }
  0x78   : > { %653 = vst.msk [vmem:[%s1053_s18 + $0x30] sm:$0x1] %vm299_vm0, %v425_v26  ;;  %658 = vst.msk [vmem:[%s1053_s18 + $0x35] sm:$0x1] %vm299_vm0, %v425_v26 }
  0x79   : > { %663 = vst.msk [vmem:[%s1053_s18 + $0x3a] sm:$0x1] %vm299_vm0, %v425_v26  ;;  %668 = vst.msk [vmem:[%s1053_s18 + $0x3f] sm:$0x1] %vm299_vm0, %v425_v26 }
  0x7a   : > { %669 = vst.msk [vmem:[%s1053_s18 + $0x40] sm:$0x1] %vm299_vm0, %v423_v27  ;;  %674 = vst.msk [vmem:[%s1053_s18 + $0x45] sm:$0x1] %vm299_vm0, %v423_v27 }
  0x7b   : > { %679 = vst.msk [vmem:[%s1053_s18 + $0x4a] sm:$0x1] %vm299_vm0, %v423_v27  ;;  %684 = vst.msk [vmem:[%s1053_s18 + $0x4f] sm:$0x1] %vm299_vm0, %v423_v27 }
  0x7c   : > { %654 = vst.msk [vmem:[%s1053_s18 + $0x31] sm:$0x1] %vm299_vm0, %v421_v30  ;;  %657 = vst.msk [vmem:[%s1053_s18 + $0x34] sm:$0x1] %vm299_vm0, %v421_v30 }
  0x7d   : > { %664 = vst.msk [vmem:[%s1053_s18 + $0x3b] sm:$0x1] %vm299_vm0, %v421_v30  ;;  %667 = vst.msk [vmem:[%s1053_s18 + $0x3e] sm:$0x1] %vm299_vm0, %v421_v30 }
  0x7e   : > { %670 = vst.msk [vmem:[%s1053_s18 + $0x41] sm:$0x1] %vm299_vm0, %v419_v31  ;;  %673 = vst.msk [vmem:[%s1053_s18 + $0x44] sm:$0x1] %vm299_vm0, %v419_v31 }
  0x7f   : > { %680 = vst.msk [vmem:[%s1053_s18 + $0x4b] sm:$0x1] %vm299_vm0, %v419_v31  ;;  %683 = vst.msk [vmem:[%s1053_s18 + $0x4e] sm:$0x1] %vm299_vm0, %v419_v31 }
  0x80   : > { %800 = shalt.err (!%p797_p5)
}
  0x81   : > { %s801_s22 = scalar_lea.hbm %s1235_s5, 1280  ;;  %s805_s25 = scalar_lea.hbm %s1303_s1, 2560 }
  0x82   : > { %p802_p4 = scmp.ne.s32.totalorder %s1235_s5, %s801_s22  ;;  %p806_p12 = scmp.lt.u32.totalorder %s1235_s5, %s1303_s1 }
  0x83   : > { %p807_p1 = scmp.lt.u32.totalorder %s805_s25, %s801_s22  ;;  %p809_p8 = scmp.lt.u32.totalorder %s801_s22, %s1235_s5 }
  0x84   : > { %p803_p7 = pnand %p802_p4, %p1311_p9 }
  0x85   : > { %p808_p3 = por %p807_p1, %p806_p12 }
  0x86   : > { %p804_p10 = pneg %p803_p7 }
  0x87   : > { %p810_p11 = por %p809_p8, %p808_p3 }
  0x89   : > { %p811_p0 = pnand %p810_p11, %p804_p10 }
  0x8b   : > { %814 = shalt.err (!%p811_p0)
}
  0x8c   : > { %s875_s4 = smov 16   ;;  %s876_s27 = smov 1  }
  0x8d   : > { %693 = dma.vmem_to_hbm [thread:$0]  (%p1311_p9), %s1237_s30, 1280, %s1235_s5, %s465_s12, %s875_s4, %s875_s4, %s876_s27  }
  0x8e PF: > { %s494_s18 = sand.u32 1, %s849_s6   ;;  %p1312_p6 = scmp.ne.s32.totalorder %s1308_s21, 0 }
  0x8f   : > { %p1313_p13 = scmp.ge.s32.totalorder %s869_s11, 2  ;;  %s495_s29 = scalar_lea.sflag [#allocation4], %s494_s18 }
  0x91   : > { %p700_p2 = pnand %p1313_p13, %p1312_p6 }
  0x93   : > { %844 = dma.done.wait (!%p700_p2), %s495_s29, 1280  }
  0x94   : > { %846 = vsyncadd (!%p700_p2), %s495_s29, 4294966016  ;;  %s17_s11 = sadd.s32 1, %s869_s11   ;;  %s1314_s6 = smov %s853_s7 }
  0x95   : > { %p14_p5 = scmp.ge.s32.totalorder %s17_s11, 4   ;;  %s1315_s7 = smov %s857_s8 }
  0x96   : > { %s1316_s8 = smov %s943_s20  ;;  %s1317_s9 = smov %s865_s10 }
  0x97   : > { %s1318_s10 = smov %s1320_s14  ;;  %16 = sbr.rel (!%p14_p5) target bundleno = 6 (0x6), region = 76 }
  0x9e   :  { %500 = vsyncpa [#allocation3], 1 }
  0x9f   :  { %502 = vsyncpa [#allocation3 + $0x1], 1 }
  0xa0   :  { %503 = vsyncpa [#allocation4], 1 }
  0xa1   :  { %505 = vsyncpa [#allocation4 + $0x1], 1 }

</bundles_post_ra>
